<compile_context>
chip_gen: v5e
topology: v5e:2x2
jax: 0.10.0
libtpu: 0.0.40
codegen_flags: <defaults>
</compile_context>

<pallas_src>
import jax
import jax.numpy as jnp
from jax.experimental import pallas as pl
from jax.experimental.pallas import tpu as pltpu


def _round_up(n, m):
    return ((n + m - 1) // m) * m


def _nsp_kernel(x_ref, w_ref, b_ref, o_ref):
    # x_ref: [TB, H], w_ref: [H, O], b_ref: [1, O], o_ref: [TB, O]
    acc = jnp.dot(x_ref[...], w_ref[...], preferred_element_type=jnp.float32)
    o_ref[...] = (acc + b_ref[...].astype(jnp.float32)).astype(o_ref.dtype)


def next_sentence_pred(x, weight, bias, *, tile_rows=2048):
    """x: [B, num_inputs], weight: [num_inputs, 2], bias: [2] -> [B, 2]."""
    B, num_inputs = x.shape
    out_features = weight.shape[1]
    bias2d = bias.reshape(1, out_features)  # 8-byte reshape, negligible prep

    # Batch tile: multiple of 8 sublanes, capped at tile_rows. Large tiles
    # amortize the ~0.35 us/step grid overhead; BlockSpec double-buffers the
    # X tile so the DMA overlaps the MXU.
    tb = min(tile_rows, _round_up(B, 8))
    grid = (pl.cdiv(B, tb),)

    x_item = jnp.dtype(x.dtype).itemsize
    w_item = jnp.dtype(weight.dtype).itemsize

    # Double-buffered X dominates VMEM. Only raise the scoped-VMEM limit when
    # it would crowd v5e's 16 MiB default (harmless on v6e/v7x; capped well
    # under v7x's 64 MiB physical VMEM).
    vmem_needed = (2 * tb * num_inputs * x_item          # double-buffered X
                   + 2 * tb * out_features * x_item      # double-buffered out
                   + 2 * num_inputs * out_features * w_item
                   + 2 * out_features * jnp.dtype(bias.dtype).itemsize)
    vmem_limit = None
    if vmem_needed > (12 << 20):
        vmem_limit = min(vmem_needed + (8 << 20), 48 << 20)

    out = pl.pallas_call(
        _nsp_kernel,
        out_shape=jax.ShapeDtypeStruct((B, out_features), x.dtype),
        grid=grid,
        in_specs=[
            pl.BlockSpec((tb, num_inputs), lambda i: (i, 0)),
            # Constant index_map -> W / bias stay VMEM-resident across steps.
            pl.BlockSpec((num_inputs, out_features), lambda i: (0, 0)),
            pl.BlockSpec((1, out_features), lambda i: (0, 0)),
        ],
        out_specs=pl.BlockSpec((tb, out_features), lambda i: (i, 0)),
        compiler_params=pltpu.CompilerParams(
            dimension_semantics=("parallel",),   # lets v7x shard across 2 TCs
            vmem_limit_bytes=vmem_limit),
        cost_estimate=pl.CostEstimate(
            flops=2 * B * num_inputs * out_features,
            transcendentals=0,
            bytes_accessed=(B * num_inputs * x_item
                            + num_inputs * out_features * w_item
                            + B * out_features * x_item),
        ),
    )(x, weight, bias2d)
    return out


if __name__ == "__main__":
    # Small shapes consistent with the module: batch=8, num_inputs(hidden)=32.
    B, H = 8, 32
    key = jax.random.PRNGKey(0)
    kx, kw, kb = jax.random.split(key, 3)

    x = jax.random.normal(kx, (B, H), dtype=jnp.float32)
    # Parameters per nn.Linear(num_inputs, 2), stored pre-transposed [H, 2].
    weight = jax.random.normal(kw, (H, 2), dtype=jnp.float32) * 0.02
    bias = jax.random.normal(kb, (2,), dtype=jnp.float32) * 0.02

    # f32 path.
    out = next_sentence_pred(x, weight, bias)
    jax.block_until_ready(out)
    ref = x @ weight + bias
    assert out.shape == (B, 2)
    assert jnp.allclose(out, ref, atol=1e-5, rtol=1e-5)

    # bf16 path (halves the HBM read of X; accumulation stays f32).
    out_bf16 = next_sentence_pred(x.astype(jnp.bfloat16),
                                  weight.astype(jnp.bfloat16),
                                  bias.astype(jnp.bfloat16))
    jax.block_until_ready(out_bf16)
    assert out_bf16.shape == (B, 2)
    assert jnp.allclose(out_bf16.astype(jnp.float32), ref, atol=3e-2, rtol=3e-2)

    print("KERNEL_OK")
</pallas_src>

<mosaic_0001>
module attributes {stable_mosaic.version = 11 : i64} {
  func.func @_nsp_kernel(%arg0: i32, %arg1: memref<8x32xf32, #tpu.memory_space<vmem>>, %arg2: memref<32x2xf32, #tpu.memory_space<vmem>>, %arg3: memref<1x2xf32, #tpu.memory_space<vmem>>, %arg4: memref<8x2xf32, #tpu.memory_space<vmem>>) attributes {dimension_semantics = [#tpu.dimension_semantics<parallel>], iteration_bounds = array<i64: 1>, scalar_prefetch = 0 : i64, scratch_operands = 0 : i64, tpu.core_type = #tpu.core_type<tc>, window_params = [{transform_indices = @transform_0, window_bounds = array<i64: 8, 32>}, {pipeline_mode = #tpu.pipeline_mode<synchronous>, transform_indices = @transform_1, window_bounds = array<i64: 32, 2>}, {pipeline_mode = #tpu.pipeline_mode<synchronous>, transform_indices = @transform_2, window_bounds = array<i64: 1, 2>}, {transform_indices = @transform_3, window_bounds = array<i64: 8, 2>}]} {
    %c0 = arith.constant 0 : index
    %c0_0 = arith.constant 0 : index
    %0 = vector.load %arg1[%c0, %c0_0] : memref<8x32xf32, #tpu.memory_space<vmem>>, vector<8x32xf32>
    %c0_1 = arith.constant 0 : index
    %c0_2 = arith.constant 0 : index
    %1 = vector.load %arg2[%c0_1, %c0_2] : memref<32x2xf32, #tpu.memory_space<vmem>>, vector<32x2xf32>
    %cst = arith.constant dense<0.000000e+00> : vector<8x2xf32>
    %2 = tpu.matmul %0, %1, %cst {dimension_numbers = #tpu.dot_dimension_numbers<[1], [0], [0], [1], [0, 0, 1, 1], [], []>} : vector<8x32xf32>, vector<32x2xf32>, vector<8x2xf32> -> vector<8x2xf32>
    %c0_3 = arith.constant 0 : index
    %c0_4 = arith.constant 0 : index
    %3 = vector.load %arg3[%c0_3, %c0_4] : memref<1x2xf32, #tpu.memory_space<vmem>>, vector<1x2xf32>
    %4 = vector.broadcast %3 : vector<1x2xf32> to vector<8x2xf32>
    %5 = arith.addf %2, %4 : vector<8x2xf32>
    %c0_5 = arith.constant 0 : index
    %c0_6 = arith.constant 0 : index
    %6 = vector.load %arg4[%c0_5, %c0_6] : memref<8x2xf32, #tpu.memory_space<vmem>>, vector<8x2xf32>
    tpu.vector_store %arg4[%c0_5, %c0_6], %5 {strides = array<i32>} : memref<8x2xf32, #tpu.memory_space<vmem>>, vector<8x2xf32>,
    return
  }
  func.func @transform_0(%arg0: i32) -> (i32, i32) {
    %c0_i32 = arith.constant 0 : i32
    %c0_i32_0 = arith.constant 0 : i32
    return %arg0, %c0_i32 : i32, i32
  }
  func.func @transform_1(%arg0: i32) -> (i32, i32) {
    %c0_i32 = arith.constant 0 : i32
    %c0_i32_0 = arith.constant 0 : i32
    %c0_i32_1 = arith.constant 0 : i32
    return %c0_i32, %c0_i32_0 : i32, i32
  }
  func.func @transform_2(%arg0: i32) -> (i32, i32) {
    %c0_i32 = arith.constant 0 : i32
    %c0_i32_0 = arith.constant 0 : i32
    %c0_i32_1 = arith.constant 0 : i32
    return %c0_i32, %c0_i32_0 : i32, i32
  }
  func.func @transform_3(%arg0: i32) -> (i32, i32) {
    %c0_i32 = arith.constant 0 : i32
    %c0_i32_0 = arith.constant 0 : i32
    return %arg0, %c0_i32 : i32, i32
  }
}

</mosaic_0001>

<bundles_post_ra>
// kernel: tpu_custom_call.1
= control target key start
LH: loop header
LB: loop body
LE: loop exit
PB: predicated region body
PF: predicated region fallthrough
CT: control target
= control target key end

     0   :  { %vm23_vm0 = vcmask 261120   ;;  %vm47_vm1 = vcmask 15360   ;;  %s96_s1 = inlined_call_operand.vmem [shape: f32[32,2], index: 1, kind: input, shape index: {}]   ;;  %s97_s2 = inlined_call_operand.vmem [shape: f32[1,2], index: 2, kind: input, shape index: {}]   ;;  %s98_s0 = inlined_call_operand.vmem [shape: f32[8,32], index: 0, kind: input, shape index: {}]   ;;  %s99_s3 = inlined_call_operand.vmem [shape: f32[8,2], index: 3, kind: output, shape index: {}]  }
   0x1   :  { %v18_v0 = vld [vmem:[%s96_s1 + $0x18] sm:$0xff]  ;;  %v17_v1 = vld [vmem:[%s96_s1 + $0x10] sm:$0xff]  ;;  %v16_v2 = vld [vmem:[%s96_s1 + $0x8] sm:$0xff] }
   0x2   :  { %39 = vmatpush.msra.mxu0 %v18_v0  ;;  %v15_v3 = vld [vmem:[%s96_s1] sm:$0xff] }
   0x3   :  { %v14_v4 = vld [vmem:[%s98_s0] sm:$0xff] }
   0x4   :  { %40 = vmatpush.msra.mxu0 %v17_v1  ;;  %v54_v5 = vld [vmem:[%s97_s2] ss:$0 sm:$0xff] }
   0x6   :  { %41 = vmatpush.msra.mxu0 %v16_v2 }
   0x8   :  { %42 = vmatpush.msra.mxu0 %v15_v3 }
   0x9   :  { %53 = vmatmul.msk.f32.vlgmr.msra.gmra.mxu0 %vm23_vm0, %v14_v4 }
  0x86   :  { %v44_v6 = vpop.f32.mrf.mxu0 }
  0x87   :  { %v45_v7 = vadd.f32 %v54_v5, %v44_v6 }
  0x89   :  { %48 = vst.msk [vmem:[%s99_s3] sm:$0xff] %vm47_vm1, %v45_v7 }

</bundles_post_ra>
